<compile_context>
chip_gen: v7x
topology: tpu7x:2x2x1
jax: 0.10.0
libtpu: 0.0.40
codegen_flags: <defaults>
</compile_context>

<pallas_src>
import functools
import math

import jax
import jax.numpy as jnp
from jax import lax
from jax.experimental import pallas as pl
from jax.experimental.pallas import tpu as pltpu

# ---- model hyper-params (small, consistent with the module) ----
BATCH = 2
SEQ = 8
HIDDEN = 32
N_HEADS = 4
HEAD = HIDDEN // N_HEADS
SCALE = math.sqrt(HEAD)          # self.head_scale
DROPOUT_P = 0.1                  # eval-mode -> identity (see TODO below)

ROWS = BATCH * SEQ               # 16
OUT_LANES = 128                  # pad ff(32)+kv(64) to a full 128-lane store

# const-table row offsets (all 8-aligned)
_ROT_R0 = 0                      # rows   0:64  -> (64, 64) rotate-half matrix for [q|k]
_COS_R0 = 2 * HIDDEN             # rows  64:80  -> (16, 64) [cos | cos]
_SIN_R0 = 2 * HIDDEN + ROWS      # rows  80:96  -> (16, 64) [sin | sin]
_BIAS_R0 = 2 * HIDDEN + 2 * ROWS  # rows 96:112 -> (16, 64) additive mask bias (lanes 0:SEQ)
_TAB_ROWS = _BIAS_R0 + ROWS      # 112


# ----------------------------------------------------------------------------
# Fused kernel: qkv-proj + RoPE + masked softmax attention + ff, one grid step
# ----------------------------------------------------------------------------
def _fused_attention_kernel(x_ref, wp_ref, bp_ref, wf_ref, bf_ref, tab_ref,
                            o_ref, attn_acc):
    # qkv = proj(x)  -- (B*N, 3*HIDDEN); RHS already (Din, Dout) and the q columns
    # carry the 1/sqrt(head_dim) factor, so scores need no extra scaling.
    qkv = (jnp.dot(x_ref[...], wp_ref[...], preferred_element_type=jnp.float32)
           + bp_ref[...])

    qk = qkv[:, :2 * HIDDEN]                       # (16, 64) scaled-q | k
    v = qkv[:, 2 * HIDDEN:]                        # (16, 32)

    # constants (single sublane-stacked table, 8-aligned row slices)
    rot2 = tab_ref[_ROT_R0:_ROT_R0 + 2 * HIDDEN, :]          # (64, 64)
    coscos = tab_ref[_COS_R0:_COS_R0 + ROWS, :]              # (16, 64)
    sinsin = tab_ref[_SIN_R0:_SIN_R0 + ROWS, :]              # (16, 64)
    bias = tab_ref[_BIAS_R0:_BIAS_R0 + ROWS, 0:SEQ]          # (16, 8) additive bias

    # rotate-half RoPE for q and k in ONE matmul + ONE multiply-add
    qk_rot = jnp.dot(qk, rot2, preferred_element_type=jnp.float32)
    qk_r = qk * coscos + qk_rot * sinsin
    q_r = qk_r[:, :HIDDEN]                         # (16, 32), already /sqrt(d)
    k_r = qk_r[:, HIDDEN:]                         # (16, 32)

    # per-(batch, head) attention; fully unrolled (B*H = 8 tiny matmul pairs),
    # results written straight into the VMEM scratch accumulator (no concats).
    for b in range(BATCH):
        r0 = b * SEQ
        bias_b = bias[r0:r0 + SEQ, :]              # (8, 8)
        for h in range(N_HEADS):
            c0 = h * HEAD
            qh = q_r[r0:r0 + SEQ, c0:c0 + HEAD]    # (8, 8)
            kh = k_r[r0:r0 + SEQ, c0:c0 + HEAD]
            vh = v[r0:r0 + SEQ, c0:c0 + HEAD]

            # q @ k^T without an explicit transpose (MXU-native transposed RHS)
            s = lax.dot_general(qh, kh, (((1,), (1,)), ((), ())),
                                preferred_element_type=jnp.float32) + bias_b
            s = s - jnp.max(s, axis=-1, keepdims=True)
            p = jnp.exp(s)
            denom = jnp.sum(p, axis=-1, keepdims=True)
            r = pl.reciprocal(denom, approx=True)  # EUP vrcp
            r = r * (2.0 - denom * r)              # one Newton step for accuracy
            p = p * r
            # TODO(synk): nn.Dropout(p=0.1) on attention probs omitted (eval-mode identity).

            attn_acc[r0:r0 + SEQ, c0:c0 + HEAD] = jnp.dot(
                p, vh, preferred_element_type=jnp.float32)

    attn = attn_acc[...]                           # (16, 32)

    # ff(attn_o); single full-width (B*N, 128) store: [ ff | k | v | pad ]
    ff = (jnp.dot(attn, wf_ref[...], preferred_element_type=jnp.float32)
          + bf_ref[...])
    pad = jnp.zeros((ROWS, OUT_LANES - 3 * HIDDEN), jnp.float32)
    o_ref[...] = jnp.concatenate([ff, qkv[:, HIDDEN:], pad], axis=-1)


# ----------------------------------------------------------------------------
# Host-side constant tables (built once)
# ----------------------------------------------------------------------------
def rope_tables(n, d):
    half = d // 2
    inv_freq = 1.0 / (10000.0 ** (jnp.arange(half, dtype=jnp.float32) / half))
    pos = jnp.arange(n, dtype=jnp.float32)
    ang = pos[:, None] * inv_freq[None, :]                        # (n, half)
    cos = jnp.concatenate([jnp.cos(ang), jnp.cos(ang)], axis=-1)  # (n, d)
    sin = jnp.concatenate([jnp.sin(ang), jnp.sin(ang)], axis=-1)  # (n, d)
    return cos, sin


def _rotate_half_matrix(d):
    # P such that (t @ P)[j] = -t[j+half] for j < half, +t[j-half] for j >= half
    half = d // 2
    eye = jnp.eye(half, dtype=jnp.float32)
    zero = jnp.zeros((half, half), jnp.float32)
    top = jnp.concatenate([zero, eye], axis=1)
    bot = jnp.concatenate([-eye, zero], axis=1)
    return jnp.concatenate([top, bot], axis=0)                    # (d, d)


@functools.lru_cache(maxsize=1)
def _static_const_tables():
    cos, sin = rope_tables(SEQ, HEAD)                             # (8, 8)
    cos_full = jnp.tile(cos, (BATCH, N_HEADS))                    # (16, 32)
    sin_full = jnp.tile(sin, (BATCH, N_HEADS))
    coscos = jnp.concatenate([cos_full, cos_full], axis=-1)       # (16, 64)
    sinsin = jnp.concatenate([sin_full, sin_full], axis=-1)       # (16, 64)
    rot_h = jnp.kron(jnp.eye(N_HEADS, dtype=jnp.float32),
                     _rotate_half_matrix(HEAD))                   # (32, 32)
    rot2 = jnp.kron(jnp.eye(2, dtype=jnp.float32), rot_h)         # (64, 64)
    return rot2, coscos, sinsin


# ----------------------------------------------------------------------------
# Forward wrapper (jitted; constant prep is folded / cached)
# ----------------------------------------------------------------------------
@jax.jit
def attention_forward(params, x, mask):
    # TODO(synk): prefix_kv concatenation branch not implemented (prefix_kv=None only).
    B, N, H = x.shape
    x2d = x.reshape(B * N, H)

    # fold 1/sqrt(head_dim) into the q columns of w_proj^T and b_proj
    col_scale = jnp.concatenate([jnp.full((H,), 1.0 / SCALE, jnp.float32),
                                 jnp.ones((2 * H,), jnp.float32)])
    wp_t = params["w_proj"].T.astype(jnp.float32) * col_scale[None, :]   # (H, 3H)
    bp = (params["b_proj"].astype(jnp.float32) * col_scale).reshape(1, 3 * H)
    wf_t = params["w_ff"].T.astype(jnp.float32)                          # (H, H)
    bf = params["b_ff"].reshape(1, H).astype(jnp.float32)

    # single sublane-stacked constant table: [rot2 ; cos|cos ; sin|sin ; bias]
    rot2, coscos, sinsin = _static_const_tables()
    # additive mask bias (0 where attended, finfo.min where masked); rows (b*N+n)
    # NOTE: a fully-masked row would make the softmax denominator ~0; the causal
    # mask never hits this.
    bias2d = jnp.where(mask[:, 0] == 0, jnp.finfo(jnp.float32).min,
                       jnp.float32(0.0)).reshape(B * N, N)
    bias_pad = jnp.pad(bias2d, ((0, 0), (0, 2 * HIDDEN - N)))             # (16, 64)
    tab = jnp.concatenate([rot2, coscos, sinsin, bias_pad], axis=0)       # (112, 64)

    slab = pl.pallas_call(
        _fused_attention_kernel,
        out_shape=jax.ShapeDtypeStruct((B * N, OUT_LANES), jnp.float32),
        grid=(1,),
        in_specs=[
            pl.BlockSpec((B * N, HIDDEN), lambda i: (0, 0)),          # x2d
            pl.BlockSpec((HIDDEN, 3 * HIDDEN), lambda i: (0, 0)),     # w_proj^T (q-scaled)
            pl.BlockSpec((1, 3 * HIDDEN), lambda i: (0, 0)),          # b_proj   (q-scaled)
            pl.BlockSpec((HIDDEN, HIDDEN), lambda i: (0, 0)),         # w_ff^T
            pl.BlockSpec((1, HIDDEN), lambda i: (0, 0)),              # b_ff
            pl.BlockSpec((_TAB_ROWS, 2 * HIDDEN), lambda i: (0, 0)),  # const table
        ],
        out_specs=pl.BlockSpec((B * N, OUT_LANES), lambda i: (0, 0)),
        scratch_shapes=[pltpu.VMEM((B * N, HIDDEN), jnp.float32)],    # attn accumulator
        compiler_params=pltpu.CompilerParams(dimension_semantics=("arbitrary",)),
    )(x2d, wp_t, bp, wf_t, bf, tab)

    out = slab[:, :HIDDEN].reshape(B, N, HIDDEN)
    # kv lanes are (c,h,d) with c in {k,v}; rebuild torch.stack((k, v))
    kv2d = slab[:, HIDDEN:3 * HIDDEN]
    next_prefix_kv = kv2d.reshape(B, N, 2, N_HEADS, HEAD).transpose(2, 0, 3, 1, 4)
    return out, next_prefix_kv


# ----------------------------------------------------------------------------
# Pure-JAX reference (same math, no Pallas) for a sanity check
# ----------------------------------------------------------------------------
def attention_forward_ref(params, x, mask):
    B, N, _ = x.shape
    qkv = x @ params["w_proj"].T + params["b_proj"]
    qkv = qkv.reshape(B, N, 3, N_HEADS, HEAD)
    qkv = jnp.transpose(qkv, (2, 0, 3, 1, 4))
    q, k, v = qkv[0], qkv[1], qkv[2]
    next_prefix_kv = jnp.stack([k, v])
    cos, sin = rope_tables(N, HEAD)

    def rope(t):
        half = HEAD // 2
        rot = jnp.concatenate([-t[..., half:], t[..., :half]], axis=-1)
        return t * cos + rot * sin

    qr, kr = rope(q), rope(k)
    scores = jnp.einsum("bhqd,bhkd->bhqk", qr, kr) / SCALE
    scores = jnp.where(mask == 0, jnp.finfo(jnp.float32).min, scores)
    p = jax.nn.softmax(scores, axis=-1)
    attn_o = jnp.einsum("bhqk,bhkd->bhqd", p, v)
    attn_o = jnp.transpose(attn_o, (0, 2, 1, 3)).reshape(B, N, HIDDEN)
    return attn_o @ params["w_ff"].T + params["b_ff"], next_prefix_kv


# ----------------------------------------------------------------------------
if __name__ == "__main__":
    key = jax.random.PRNGKey(0)
    k_x, k_wp, k_bp, k_wf, k_bf = jax.random.split(key, 5)

    params = {
        "w_proj": 0.02 * jax.random.normal(k_wp, (3 * HIDDEN, HIDDEN), jnp.float32),
        "b_proj": 0.02 * jax.random.normal(k_bp, (3 * HIDDEN,), jnp.float32),
        "w_ff": 0.02 * jax.random.normal(k_wf, (HIDDEN, HIDDEN), jnp.float32),
        "b_ff": 0.02 * jax.random.normal(k_bf, (HIDDEN,), jnp.float32),
    }

    x = jax.random.normal(k_x, (BATCH, SEQ, HIDDEN), jnp.float32)
    # causal mask, shape (B, 1, N, N); 1 = attend, 0 = masked
    causal = jnp.tril(jnp.ones((SEQ, SEQ), jnp.float32))
    mask = jnp.broadcast_to(causal[None, None], (BATCH, 1, SEQ, SEQ))

    out, next_kv = attention_forward(params, x, mask)
    out = jax.block_until_ready(out)
    next_kv = jax.block_until_ready(next_kv)

    ref_out, ref_kv = attention_forward_ref(params, x, mask)
    assert out.shape == (BATCH, SEQ, HIDDEN)
    assert next_kv.shape == (2, BATCH, N_HEADS, SEQ, HEAD)
    assert jnp.allclose(out, ref_out, rtol=1e-4, atol=1e-5)
    assert jnp.allclose(next_kv, ref_kv, rtol=1e-4, atol=1e-5)

    print("KERNEL_OK")
</pallas_src>

<mosaic_0001>
module attributes {stable_mosaic.version = 11 : i64} {
  func.func @_fused_attention_kernel(%arg0: i32, %arg1: memref<16x32xf32, #tpu.memory_space<vmem>>, %arg2: memref<32x96xf32, #tpu.memory_space<vmem>>, %arg3: memref<1x96xf32, #tpu.memory_space<vmem>>, %arg4: memref<32x32xf32, #tpu.memory_space<vmem>>, %arg5: memref<1x32xf32, #tpu.memory_space<vmem>>, %arg6: memref<112x64xf32, #tpu.memory_space<vmem>>, %arg7: memref<16x128xf32, #tpu.memory_space<vmem>>, %arg8: memref<16x32xf32, #tpu.memory_space<vmem>>) attributes {dimension_semantics = [#tpu.dimension_semantics<arbitrary>], iteration_bounds = array<i64: 1>, scalar_prefetch = 0 : i64, scratch_operands = 1 : i64, tpu.core_type = #tpu.core_type<tc>, window_params = [{pipeline_mode = #tpu.pipeline_mode<synchronous>, transform_indices = @transform_0, window_bounds = array<i64: 16, 32>}, {pipeline_mode = #tpu.pipeline_mode<synchronous>, transform_indices = @transform_1, window_bounds = array<i64: 32, 96>}, {pipeline_mode = #tpu.pipeline_mode<synchronous>, transform_indices = @transform_2, window_bounds = array<i64: 1, 96>}, {pipeline_mode = #tpu.pipeline_mode<synchronous>, transform_indices = @transform_3, window_bounds = array<i64: 32, 32>}, {pipeline_mode = #tpu.pipeline_mode<synchronous>, transform_indices = @transform_4, window_bounds = array<i64: 1, 32>}, {pipeline_mode = #tpu.pipeline_mode<synchronous>, transform_indices = @transform_5, window_bounds = array<i64: 112, 64>}, {pipeline_mode = #tpu.pipeline_mode<synchronous>, transform_indices = @transform_6, window_bounds = array<i64: 16, 128>}]} {
    %c0 = arith.constant 0 : index
    %c0_0 = arith.constant 0 : index
    %0 = vector.load %arg1[%c0, %c0_0] : memref<16x32xf32, #tpu.memory_space<vmem>>, vector<16x32xf32>
    %c0_1 = arith.constant 0 : index
    %c0_2 = arith.constant 0 : index
    %1 = vector.load %arg2[%c0_1, %c0_2] : memref<32x96xf32, #tpu.memory_space<vmem>>, vector<32x96xf32>
    %cst = arith.constant dense<0.000000e+00> : vector<16x96xf32>
    %2 = tpu.matmul %0, %1, %cst {dimension_numbers = #tpu.dot_dimension_numbers<[1], [0], [0], [1], [0, 0, 1, 1], [], []>} : vector<16x32xf32>, vector<32x96xf32>, vector<16x96xf32> -> vector<16x96xf32>
    %c0_3 = arith.constant 0 : index
    %c0_4 = arith.constant 0 : index
    %3 = vector.load %arg3[%c0_3, %c0_4] : memref<1x96xf32, #tpu.memory_space<vmem>>, vector<1x96xf32>
    %4 = vector.broadcast %3 : vector<1x96xf32> to vector<16x96xf32>
    %5 = arith.addf %2, %4 : vector<16x96xf32>
    %6 = vector.extract_strided_slice %5 {offsets = [0, 0], sizes = [16, 64], strides = [1, 1]} : vector<16x96xf32> to vector<16x64xf32>
    %7 = vector.extract_strided_slice %5 {offsets = [0, 64], sizes = [16, 32], strides = [1, 1]} : vector<16x96xf32> to vector<16x32xf32>
    %c0_5 = arith.constant 0 : index
    %c0_6 = arith.constant 0 : index
    %8 = vector.load %arg6[%c0_5, %c0_6] : memref<112x64xf32, #tpu.memory_space<vmem>>, vector<64x64xf32>
    %c64 = arith.constant 64 : index
    %c0_7 = arith.constant 0 : index
    %9 = vector.load %arg6[%c64, %c0_7] : memref<112x64xf32, #tpu.memory_space<vmem>>, vector<16x64xf32>
    %c80 = arith.constant 80 : index
    %c0_8 = arith.constant 0 : index
    %10 = vector.load %arg6[%c80, %c0_8] : memref<112x64xf32, #tpu.memory_space<vmem>>, vector<16x64xf32>
    %c96 = arith.constant 96 : index
    %c0_9 = arith.constant 0 : index
    %11 = vector.load %arg6[%c96, %c0_9] : memref<112x64xf32, #tpu.memory_space<vmem>>, vector<16x8xf32>
    %cst_10 = arith.constant dense<0.000000e+00> : vector<16x64xf32>
    %12 = tpu.matmul %6, %8, %cst_10 {dimension_numbers = #tpu.dot_dimension_numbers<[1], [0], [0], [1], [0, 0, 1, 1], [], []>} : vector<16x64xf32>, vector<64x64xf32>, vector<16x64xf32> -> vector<16x64xf32>
    %13 = arith.mulf %6, %9 : vector<16x64xf32>
    %14 = arith.mulf %12, %10 : vector<16x64xf32>
    %15 = arith.addf %13, %14 : vector<16x64xf32>
    %16 = vector.extract_strided_slice %15 {offsets = [0, 0], sizes = [16, 32], strides = [1, 1]} : vector<16x64xf32> to vector<16x32xf32>
    %17 = vector.extract_strided_slice %15 {offsets = [0, 32], sizes = [16, 32], strides = [1, 1]} : vector<16x64xf32> to vector<16x32xf32>
    %18 = vector.extract_strided_slice %11 {offsets = [0, 0], sizes = [8, 8], strides = [1, 1]} : vector<16x8xf32> to vector<8x8xf32>
    %19 = vector.extract_strided_slice %16 {offsets = [0, 0], sizes = [8, 8], strides = [1, 1]} : vector<16x32xf32> to vector<8x8xf32>
    %20 = vector.extract_strided_slice %17 {offsets = [0, 0], sizes = [8, 8], strides = [1, 1]} : vector<16x32xf32> to vector<8x8xf32>
    %21 = vector.extract_strided_slice %7 {offsets = [0, 0], sizes = [8, 8], strides = [1, 1]} : vector<16x32xf32> to vector<8x8xf32>
    %cst_11 = arith.constant dense<0.000000e+00> : vector<8x8xf32>
    %22 = tpu.matmul %19, %20, %cst_11 {dimension_numbers = #tpu.dot_dimension_numbers<[1], [1], [0], [0], [0, 0, 1, 0], [], []>} : vector<8x8xf32>, vector<8x8xf32>, vector<8x8xf32> -> vector<8x8xf32>
    %23 = arith.addf %22, %18 : vector<8x8xf32>
    %cst_12 = arith.constant dense<0xFF800000> : vector<8xf32>
    %24 = vector.multi_reduction <maximumf>, %23, %cst_12 [1] : vector<8x8xf32> to vector<8xf32>
    %25 = vector.shape_cast %24 : vector<8xf32> to vector<8x1xf32>
    %26 = vector.broadcast %25 : vector<8x1xf32> to vector<8x8xf32>
    %27 = arith.subf %23, %26 : vector<8x8xf32>
    %28 = math.exp %27 : vector<8x8xf32>
    %cst_13 = arith.constant dense<0.000000e+00> : vector<8xf32>
    %29 = vector.multi_reduction <add>, %28, %cst_13 [1] : vector<8x8xf32> to vector<8xf32>
    %30 = vector.shape_cast %29 : vector<8xf32> to vector<8x1xf32>
    %31 = tpu.reciprocal %30 {approx = true} : vector<8x1xf32> -> vector<8x1xf32>
    %32 = arith.mulf %30, %31 : vector<8x1xf32>
    %cst_14 = arith.constant 2.000000e+00 : f32
    %33 = vector.broadcast %cst_14 : f32 to vector<8x1xf32>
    %34 = arith.subf %33, %32 : vector<8x1xf32>
    %35 = arith.mulf %31, %34 : vector<8x1xf32>
    %36 = vector.broadcast %35 : vector<8x1xf32> to vector<8x8xf32>
    %37 = arith.mulf %28, %36 : vector<8x8xf32>
    %cst_15 = arith.constant dense<0.000000e+00> : vector<8x8xf32>
    %38 = tpu.matmul %37, %21, %cst_15 {dimension_numbers = #tpu.dot_dimension_numbers<[1], [0], [0], [1], [0, 0, 1, 1], [], []>} : vector<8x8xf32>, vector<8x8xf32>, vector<8x8xf32> -> vector<8x8xf32>
    %c0_16 = arith.constant 0 : index
    %c0_17 = arith.constant 0 : index
    %39 = vector.load %arg8[%c0_16, %c0_17] : memref<16x32xf32, #tpu.memory_space<vmem>>, vector<8x8xf32>
    tpu.vector_store %arg8[%c0_16, %c0_17], %38 {strides = array<i32>} : memref<16x32xf32, #tpu.memory_space<vmem>>, vector<8x8xf32>,
    %40 = vector.extract_strided_slice %16 {offsets = [0, 8], sizes = [8, 8], strides = [1, 1]} : vector<16x32xf32> to vector<8x8xf32>
    %41 = vector.extract_strided_slice %17 {offsets = [0, 8], sizes = [8, 8], strides = [1, 1]} : vector<16x32xf32> to vector<8x8xf32>
    %42 = vector.extract_strided_slice %7 {offsets = [0, 8], sizes = [8, 8], strides = [1, 1]} : vector<16x32xf32> to vector<8x8xf32>
    %cst_18 = arith.constant dense<0.000000e+00> : vector<8x8xf32>
    %43 = tpu.matmul %40, %41, %cst_18 {dimension_numbers = #tpu.dot_dimension_numbers<[1], [1], [0], [0], [0, 0, 1, 0], [], []>} : vector<8x8xf32>, vector<8x8xf32>, vector<8x8xf32> -> vector<8x8xf32>
    %44 = arith.addf %43, %18 : vector<8x8xf32>
    %cst_19 = arith.constant dense<0xFF800000> : vector<8xf32>
    %45 = vector.multi_reduction <maximumf>, %44, %cst_19 [1] : vector<8x8xf32> to vector<8xf32>
    %46 = vector.shape_cast %45 : vector<8xf32> to vector<8x1xf32>
    %47 = vector.broadcast %46 : vector<8x1xf32> to vector<8x8xf32>
    %48 = arith.subf %44, %47 : vector<8x8xf32>
    %49 = math.exp %48 : vector<8x8xf32>
    %cst_20 = arith.constant dense<0.000000e+00> : vector<8xf32>
    %50 = vector.multi_reduction <add>, %49, %cst_20 [1] : vector<8x8xf32> to vector<8xf32>
    %51 = vector.shape_cast %50 : vector<8xf32> to vector<8x1xf32>
    %52 = tpu.reciprocal %51 {approx = true} : vector<8x1xf32> -> vector<8x1xf32>
    %53 = arith.mulf %51, %52 : vector<8x1xf32>
    %cst_21 = arith.constant 2.000000e+00 : f32
    %54 = vector.broadcast %cst_21 : f32 to vector<8x1xf32>
    %55 = arith.subf %54, %53 : vector<8x1xf32>
    %56 = arith.mulf %52, %55 : vector<8x1xf32>
    %57 = vector.broadcast %56 : vector<8x1xf32> to vector<8x8xf32>
    %58 = arith.mulf %49, %57 : vector<8x8xf32>
    %cst_22 = arith.constant dense<0.000000e+00> : vector<8x8xf32>
    %59 = tpu.matmul %58, %42, %cst_22 {dimension_numbers = #tpu.dot_dimension_numbers<[1], [0], [0], [1], [0, 0, 1, 1], [], []>} : vector<8x8xf32>, vector<8x8xf32>, vector<8x8xf32> -> vector<8x8xf32>
    %c0_23 = arith.constant 0 : index
    %c8 = arith.constant 8 : index
    %60 = vector.load %arg8[%c0_23, %c8] : memref<16x32xf32, #tpu.memory_space<vmem>>, vector<8x8xf32>
    tpu.vector_store %arg8[%c0_23, %c8], %59 {strides = array<i32>} : memref<16x32xf32, #tpu.memory_space<vmem>>, vector<8x8xf32>,
    %61 = vector.extract_strided_slice %16 {offsets = [0, 16], sizes = [8, 8], strides = [1, 1]} : vector<16x32xf32> to vector<8x8xf32>
    %62 = vector.extract_strided_slice %17 {offsets = [0, 16], sizes = [8, 8], strides = [1, 1]} : vector<16x32xf32> to vector<8x8xf32>
    %63 = vector.extract_strided_slice %7 {offsets = [0, 16], sizes = [8, 8], strides = [1, 1]} : vector<16x32xf32> to vector<8x8xf32>
    %cst_24 = arith.constant dense<0.000000e+00> : vector<8x8xf32>
    %64 = tpu.matmul %61, %62, %cst_24 {dimension_numbers = #tpu.dot_dimension_numbers<[1], [1], [0], [0], [0, 0, 1, 0], [], []>} : vector<8x8xf32>, vector<8x8xf32>, vector<8x8xf32> -> vector<8x8xf32>
    %65 = arith.addf %64, %18 : vector<8x8xf32>
    %cst_25 = arith.constant dense<0xFF800000> : vector<8xf32>
    %66 = vector.multi_reduction <maximumf>, %65, %cst_25 [1] : vector<8x8xf32> to vector<8xf32>
    %67 = vector.shape_cast %66 : vector<8xf32> to vector<8x1xf32>
    %68 = vector.broadcast %67 : vector<8x1xf32> to vector<8x8xf32>
    %69 = arith.subf %65, %68 : vector<8x8xf32>
    %70 = math.exp %69 : vector<8x8xf32>
    %cst_26 = arith.constant dense<0.000000e+00> : vector<8xf32>
    %71 = vector.multi_reduction <add>, %70, %cst_26 [1] : vector<8x8xf32> to vector<8xf32>
    %72 = vector.shape_cast %71 : vector<8xf32> to vector<8x1xf32>
    %73 = tpu.reciprocal %72 {approx = true} : vector<8x1xf32> -> vector<8x1xf32>
    %74 = arith.mulf %72, %73 : vector<8x1xf32>
    %cst_27 = arith.constant 2.000000e+00 : f32
    %75 = vector.broadcast %cst_27 : f32 to vector<8x1xf32>
    %76 = arith.subf %75, %74 : vector<8x1xf32>
    %77 = arith.mulf %73, %76 : vector<8x1xf32>
    %78 = vector.broadcast %77 : vector<8x1xf32> to vector<8x8xf32>
    %79 = arith.mulf %70, %78 : vector<8x8xf32>
    %cst_28 = arith.constant dense<0.000000e+00> : vector<8x8xf32>
    %80 = tpu.matmul %79, %63, %cst_28 {dimension_numbers = #tpu.dot_dimension_numbers<[1], [0], [0], [1], [0, 0, 1, 1], [], []>} : vector<8x8xf32>, vector<8x8xf32>, vector<8x8xf32> -> vector<8x8xf32>
    %c0_29 = arith.constant 0 : index
    %c16 = arith.constant 16 : index
    %81 = vector.load %arg8[%c0_29, %c16] : memref<16x32xf32, #tpu.memory_space<vmem>>, vector<8x8xf32>
    tpu.vector_store %arg8[%c0_29, %c16], %80 {strides = array<i32>} : memref<16x32xf32, #tpu.memory_space<vmem>>, vector<8x8xf32>,
    %82 = vector.extract_strided_slice %16 {offsets = [0, 24], sizes = [8, 8], strides = [1, 1]} : vector<16x32xf32> to vector<8x8xf32>
    %83 = vector.extract_strided_slice %17 {offsets = [0, 24], sizes = [8, 8], strides = [1, 1]} : vector<16x32xf32> to vector<8x8xf32>
    %84 = vector.extract_strided_slice %7 {offsets = [0, 24], sizes = [8, 8], strides = [1, 1]} : vector<16x32xf32> to vector<8x8xf32>
    %cst_30 = arith.constant dense<0.000000e+00> : vector<8x8xf32>
    %85 = tpu.matmul %82, %83, %cst_30 {dimension_numbers = #tpu.dot_dimension_numbers<[1], [1], [0], [0], [0, 0, 1, 0], [], []>} : vector<8x8xf32>, vector<8x8xf32>, vector<8x8xf32> -> vector<8x8xf32>
    %86 = arith.addf %85, %18 : vector<8x8xf32>
    %cst_31 = arith.constant dense<0xFF800000> : vector<8xf32>
    %87 = vector.multi_reduction <maximumf>, %86, %cst_31 [1] : vector<8x8xf32> to vector<8xf32>
    %88 = vector.shape_cast %87 : vector<8xf32> to vector<8x1xf32>
    %89 = vector.broadcast %88 : vector<8x1xf32> to vector<8x8xf32>
    %90 = arith.subf %86, %89 : vector<8x8xf32>
    %91 = math.exp %90 : vector<8x8xf32>
    %cst_32 = arith.constant dense<0.000000e+00> : vector<8xf32>
    %92 = vector.multi_reduction <add>, %91, %cst_32 [1] : vector<8x8xf32> to vector<8xf32>
    %93 = vector.shape_cast %92 : vector<8xf32> to vector<8x1xf32>
    %94 = tpu.reciprocal %93 {approx = true} : vector<8x1xf32> -> vector<8x1xf32>
    %95 = arith.mulf %93, %94 : vector<8x1xf32>
    %cst_33 = arith.constant 2.000000e+00 : f32
    %96 = vector.broadcast %cst_33 : f32 to vector<8x1xf32>
    %97 = arith.subf %96, %95 : vector<8x1xf32>
    %98 = arith.mulf %94, %97 : vector<8x1xf32>
    %99 = vector.broadcast %98 : vector<8x1xf32> to vector<8x8xf32>
    %100 = arith.mulf %91, %99 : vector<8x8xf32>
    %cst_34 = arith.constant dense<0.000000e+00> : vector<8x8xf32>
    %101 = tpu.matmul %100, %84, %cst_34 {dimension_numbers = #tpu.dot_dimension_numbers<[1], [0], [0], [1], [0, 0, 1, 1], [], []>} : vector<8x8xf32>, vector<8x8xf32>, vector<8x8xf32> -> vector<8x8xf32>
    %c0_35 = arith.constant 0 : index
    %c24 = arith.constant 24 : index
    %102 = vector.load %arg8[%c0_35, %c24] : memref<16x32xf32, #tpu.memory_space<vmem>>, vector<8x8xf32>
    tpu.vector_store %arg8[%c0_35, %c24], %101 {strides = array<i32>} : memref<16x32xf32, #tpu.memory_space<vmem>>, vector<8x8xf32>,
    %103 = vector.extract_strided_slice %11 {offsets = [8, 0], sizes = [8, 8], strides = [1, 1]} : vector<16x8xf32> to vector<8x8xf32>
    %104 = vector.extract_strided_slice %16 {offsets = [8, 0], sizes = [8, 8], strides = [1, 1]} : vector<16x32xf32> to vector<8x8xf32>
    %105 = vector.extract_strided_slice %17 {offsets = [8, 0], sizes = [8, 8], strides = [1, 1]} : vector<16x32xf32> to vector<8x8xf32>
    %106 = vector.extract_strided_slice %7 {offsets = [8, 0], sizes = [8, 8], strides = [1, 1]} : vector<16x32xf32> to vector<8x8xf32>
    %cst_36 = arith.constant dense<0.000000e+00> : vector<8x8xf32>
    %107 = tpu.matmul %104, %105, %cst_36 {dimension_numbers = #tpu.dot_dimension_numbers<[1], [1], [0], [0], [0, 0, 1, 0], [], []>} : vector<8x8xf32>, vector<8x8xf32>, vector<8x8xf32> -> vector<8x8xf32>
    %108 = arith.addf %107, %103 : vector<8x8xf32>
    %cst_37 = arith.constant dense<0xFF800000> : vector<8xf32>
    %109 = vector.multi_reduction <maximumf>, %108, %cst_37 [1] : vector<8x8xf32> to vector<8xf32>
    %110 = vector.shape_cast %109 : vector<8xf32> to vector<8x1xf32>
    %111 = vector.broadcast %110 : vector<8x1xf32> to vector<8x8xf32>
    %112 = arith.subf %108, %111 : vector<8x8xf32>
    %113 = math.exp %112 : vector<8x8xf32>
    %cst_38 = arith.constant dense<0.000000e+00> : vector<8xf32>
    %114 = vector.multi_reduction <add>, %113, %cst_38 [1] : vector<8x8xf32> to vector<8xf32>
    %115 = vector.shape_cast %114 : vector<8xf32> to vector<8x1xf32>
    %116 = tpu.reciprocal %115 {approx = true} : vector<8x1xf32> -> vector<8x1xf32>
    %117 = arith.mulf %115, %116 : vector<8x1xf32>
    %cst_39 = arith.constant 2.000000e+00 : f32
    %118 = vector.broadcast %cst_39 : f32 to vector<8x1xf32>
    %119 = arith.subf %118, %117 : vector<8x1xf32>
    %120 = arith.mulf %116, %119 : vector<8x1xf32>
    %121 = vector.broadcast %120 : vector<8x1xf32> to vector<8x8xf32>
    %122 = arith.mulf %113, %121 : vector<8x8xf32>
    %cst_40 = arith.constant dense<0.000000e+00> : vector<8x8xf32>
    %123 = tpu.matmul %122, %106, %cst_40 {dimension_numbers = #tpu.dot_dimension_numbers<[1], [0], [0], [1], [0, 0, 1, 1], [], []>} : vector<8x8xf32>, vector<8x8xf32>, vector<8x8xf32> -> vector<8x8xf32>
    %c8_41 = arith.constant 8 : index
    %c0_42 = arith.constant 0 : index
    %124 = vector.load %arg8[%c8_41, %c0_42] : memref<16x32xf32, #tpu.memory_space<vmem>>, vector<8x8xf32>
    tpu.vector_store %arg8[%c8_41, %c0_42], %123 {strides = array<i32>} : memref<16x32xf32, #tpu.memory_space<vmem>>, vector<8x8xf32>,
    %125 = vector.extract_strided_slice %16 {offsets = [8, 8], sizes = [8, 8], strides = [1, 1]} : vector<16x32xf32> to vector<8x8xf32>
    %126 = vector.extract_strided_slice %17 {offsets = [8, 8], sizes = [8, 8], strides = [1, 1]} : vector<16x32xf32> to vector<8x8xf32>
    %127 = vector.extract_strided_slice %7 {offsets = [8, 8], sizes = [8, 8], strides = [1, 1]} : vector<16x32xf32> to vector<8x8xf32>
    %cst_43 = arith.constant dense<0.000000e+00> : vector<8x8xf32>
    %128 = tpu.matmul %125, %126, %cst_43 {dimension_numbers = #tpu.dot_dimension_numbers<[1], [1], [0], [0], [0, 0, 1, 0], [], []>} : vector<8x8xf32>, vector<8x8xf32>, vector<8x8xf32> -> vector<8x8xf32>
    %129 = arith.addf %128, %103 : vector<8x8xf32>
    %cst_44 = arith.constant dense<0xFF800000> : vector<8xf32>
    %130 = vector.multi_reduction <maximumf>, %129, %cst_44 [1] : vector<8x8xf32> to vector<8xf32>
    %131 = vector.shape_cast %130 : vector<8xf32> to vector<8x1xf32>
    %132 = vector.broadcast %131 : vector<8x1xf32> to vector<8x8xf32>
    %133 = arith.subf %129, %132 : vector<8x8xf32>
    %134 = math.exp %133 : vector<8x8xf32>
    %cst_45 = arith.constant dense<0.000000e+00> : vector<8xf32>
    %135 = vector.multi_reduction <add>, %134, %cst_45 [1] : vector<8x8xf32> to vector<8xf32>
    %136 = vector.shape_cast %135 : vector<8xf32> to vector<8x1xf32>
    %137 = tpu.reciprocal %136 {approx = true} : vector<8x1xf32> -> vector<8x1xf32>
    %138 = arith.mulf %136, %137 : vector<8x1xf32>
    %cst_46 = arith.constant 2.000000e+00 : f32
    %139 = vector.broadcast %cst_46 : f32 to vector<8x1xf32>
    %140 = arith.subf %139, %138 : vector<8x1xf32>
    %141 = arith.mulf %137, %140 : vector<8x1xf32>
    %142 = vector.broadcast %141 : vector<8x1xf32> to vector<8x8xf32>
    %143 = arith.mulf %134, %142 : vector<8x8xf32>
    %cst_47 = arith.constant dense<0.000000e+00> : vector<8x8xf32>
    %144 = tpu.matmul %143, %127, %cst_47 {dimension_numbers = #tpu.dot_dimension_numbers<[1], [0], [0], [1], [0, 0, 1, 1], [], []>} : vector<8x8xf32>, vector<8x8xf32>, vector<8x8xf32> -> vector<8x8xf32>
    %c8_48 = arith.constant 8 : index
    %c8_49 = arith.constant 8 : index
    %145 = vector.load %arg8[%c8_48, %c8_49] : memref<16x32xf32, #tpu.memory_space<vmem>>, vector<8x8xf32>
    tpu.vector_store %arg8[%c8_48, %c8_49], %144 {strides = array<i32>} : memref<16x32xf32, #tpu.memory_space<vmem>>, vector<8x8xf32>,
    %146 = vector.extract_strided_slice %16 {offsets = [8, 16], sizes = [8, 8], strides = [1, 1]} : vector<16x32xf32> to vector<8x8xf32>
    %147 = vector.extract_strided_slice %17 {offsets = [8, 16], sizes = [8, 8], strides = [1, 1]} : vector<16x32xf32> to vector<8x8xf32>
    %148 = vector.extract_strided_slice %7 {offsets = [8, 16], sizes = [8, 8], strides = [1, 1]} : vector<16x32xf32> to vector<8x8xf32>
    %cst_50 = arith.constant dense<0.000000e+00> : vector<8x8xf32>
    %149 = tpu.matmul %146, %147, %cst_50 {dimension_numbers = #tpu.dot_dimension_numbers<[1], [1], [0], [0], [0, 0, 1, 0], [], []>} : vector<8x8xf32>, vector<8x8xf32>, vector<8x8xf32> -> vector<8x8xf32>
    %150 = arith.addf %149, %103 : vector<8x8xf32>
    %cst_51 = arith.constant dense<0xFF800000> : vector<8xf32>
    %151 = vector.multi_reduction <maximumf>, %150, %cst_51 [1] : vector<8x8xf32> to vector<8xf32>
    %152 = vector.shape_cast %151 : vector<8xf32> to vector<8x1xf32>
    %153 = vector.broadcast %152 : vector<8x1xf32> to vector<8x8xf32>
    %154 = arith.subf %150, %153 : vector<8x8xf32>
    %155 = math.exp %154 : vector<8x8xf32>
    %cst_52 = arith.constant dense<0.000000e+00> : vector<8xf32>
    %156 = vector.multi_reduction <add>, %155, %cst_52 [1] : vector<8x8xf32> to vector<8xf32>
    %157 = vector.shape_cast %156 : vector<8xf32> to vector<8x1xf32>
    %158 = tpu.reciprocal %157 {approx = true} : vector<8x1xf32> -> vector<8x1xf32>
    %159 = arith.mulf %157, %158 : vector<8x1xf32>
    %cst_53 = arith.constant 2.000000e+00 : f32
    %160 = vector.broadcast %cst_53 : f32 to vector<8x1xf32>
    %161 = arith.subf %160, %159 : vector<8x1xf32>
    %162 = arith.mulf %158, %161 : vector<8x1xf32>
    %163 = vector.broadcast %162 : vector<8x1xf32> to vector<8x8xf32>
    %164 = arith.mulf %155, %163 : vector<8x8xf32>
    %cst_54 = arith.constant dense<0.000000e+00> : vector<8x8xf32>
    %165 = tpu.matmul %164, %148, %cst_54 {dimension_numbers = #tpu.dot_dimension_numbers<[1], [0], [0], [1], [0, 0, 1, 1], [], []>} : vector<8x8xf32>, vector<8x8xf32>, vector<8x8xf32> -> vector<8x8xf32>
    %c8_55 = arith.constant 8 : index
    %c16_56 = arith.constant 16 : index
    %166 = vector.load %arg8[%c8_55, %c16_56] : memref<16x32xf32, #tpu.memory_space<vmem>>, vector<8x8xf32>
    tpu.vector_store %arg8[%c8_55, %c16_56], %165 {strides = array<i32>} : memref<16x32xf32, #tpu.memory_space<vmem>>, vector<8x8xf32>,
    %167 = vector.extract_strided_slice %16 {offsets = [8, 24], sizes = [8, 8], strides = [1, 1]} : vector<16x32xf32> to vector<8x8xf32>
    %168 = vector.extract_strided_slice %17 {offsets = [8, 24], sizes = [8, 8], strides = [1, 1]} : vector<16x32xf32> to vector<8x8xf32>
    %169 = vector.extract_strided_slice %7 {offsets = [8, 24], sizes = [8, 8], strides = [1, 1]} : vector<16x32xf32> to vector<8x8xf32>
    %cst_57 = arith.constant dense<0.000000e+00> : vector<8x8xf32>
    %170 = tpu.matmul %167, %168, %cst_57 {dimension_numbers = #tpu.dot_dimension_numbers<[1], [1], [0], [0], [0, 0, 1, 0], [], []>} : vector<8x8xf32>, vector<8x8xf32>, vector<8x8xf32> -> vector<8x8xf32>
    %171 = arith.addf %170, %103 : vector<8x8xf32>
    %cst_58 = arith.constant dense<0xFF800000> : vector<8xf32>
    %172 = vector.multi_reduction <maximumf>, %171, %cst_58 [1] : vector<8x8xf32> to vector<8xf32>
    %173 = vector.shape_cast %172 : vector<8xf32> to vector<8x1xf32>
    %174 = vector.broadcast %173 : vector<8x1xf32> to vector<8x8xf32>
    %175 = arith.subf %171, %174 : vector<8x8xf32>
    %176 = math.exp %175 : vector<8x8xf32>
    %cst_59 = arith.constant dense<0.000000e+00> : vector<8xf32>
    %177 = vector.multi_reduction <add>, %176, %cst_59 [1] : vector<8x8xf32> to vector<8xf32>
    %178 = vector.shape_cast %177 : vector<8xf32> to vector<8x1xf32>
    %179 = tpu.reciprocal %178 {approx = true} : vector<8x1xf32> -> vector<8x1xf32>
    %180 = arith.mulf %178, %179 : vector<8x1xf32>
    %cst_60 = arith.constant 2.000000e+00 : f32
    %181 = vector.broadcast %cst_60 : f32 to vector<8x1xf32>
    %182 = arith.subf %181, %180 : vector<8x1xf32>
    %183 = arith.mulf %179, %182 : vector<8x1xf32>
    %184 = vector.broadcast %183 : vector<8x1xf32> to vector<8x8xf32>
    %185 = arith.mulf %176, %184 : vector<8x8xf32>
    %cst_61 = arith.constant dense<0.000000e+00> : vector<8x8xf32>
    %186 = tpu.matmul %185, %169, %cst_61 {dimension_numbers = #tpu.dot_dimension_numbers<[1], [0], [0], [1], [0, 0, 1, 1], [], []>} : vector<8x8xf32>, vector<8x8xf32>, vector<8x8xf32> -> vector<8x8xf32>
    %c8_62 = arith.constant 8 : index
    %c24_63 = arith.constant 24 : index
    %187 = vector.load %arg8[%c8_62, %c24_63] : memref<16x32xf32, #tpu.memory_space<vmem>>, vector<8x8xf32>
    tpu.vector_store %arg8[%c8_62, %c24_63], %186 {strides = array<i32>} : memref<16x32xf32, #tpu.memory_space<vmem>>, vector<8x8xf32>,
    %c0_64 = arith.constant 0 : index
    %c0_65 = arith.constant 0 : index
    %188 = vector.load %arg8[%c0_64, %c0_65] : memref<16x32xf32, #tpu.memory_space<vmem>>, vector<16x32xf32>
    %c0_66 = arith.constant 0 : index
    %c0_67 = arith.constant 0 : index
    %189 = vector.load %arg4[%c0_66, %c0_67] : memref<32x32xf32, #tpu.memory_space<vmem>>, vector<32x32xf32>
    %cst_68 = arith.constant dense<0.000000e+00> : vector<16x32xf32>
    %190 = tpu.matmul %188, %189, %cst_68 {dimension_numbers = #tpu.dot_dimension_numbers<[1], [0], [0], [1], [0, 0, 1, 1], [], []>} : vector<16x32xf32>, vector<32x32xf32>, vector<16x32xf32> -> vector<16x32xf32>
    %c0_69 = arith.constant 0 : index
    %c0_70 = arith.constant 0 : index
    %191 = vector.load %arg5[%c0_69, %c0_70] : memref<1x32xf32, #tpu.memory_space<vmem>>, vector<1x32xf32>
    %192 = vector.broadcast %191 : vector<1x32xf32> to vector<16x32xf32>
    %193 = arith.addf %190, %192 : vector<16x32xf32>
    %cst_71 = arith.constant 0.000000e+00 : f32
    %194 = vector.broadcast %cst_71 : f32 to vector<16x32xf32>
    %195 = vector.extract_strided_slice %5 {offsets = [0, 32], sizes = [16, 64], strides = [1, 1]} : vector<16x96xf32> to vector<16x64xf32>
    %196 = tpu.concatenate %193, %195, %194 in 1 : vector<16x32xf32>, vector<16x64xf32>, vector<16x32xf32> -> vector<16x128xf32>
    %c0_72 = arith.constant 0 : index
    %c0_73 = arith.constant 0 : index
    %197 = vector.load %arg7[%c0_72, %c0_73] : memref<16x128xf32, #tpu.memory_space<vmem>>, vector<16x128xf32>
    tpu.vector_store %arg7[%c0_72, %c0_73], %196 {strides = array<i32>} : memref<16x128xf32, #tpu.memory_space<vmem>>, vector<16x128xf32>,
    return
  }
  func.func @transform_0(%arg0: i32) -> (i32, i32) {
    %c0_i32 = arith.constant 0 : i32
    %c0_i32_0 = arith.constant 0 : i32
    %c0_i32_1 = arith.constant 0 : i32
    return %c0_i32, %c0_i32_0 : i32, i32
  }
  func.func @transform_1(%arg0: i32) -> (i32, i32) {
    %c0_i32 = arith.constant 0 : i32
    %c0_i32_0 = arith.constant 0 : i32
    %c0_i32_1 = arith.constant 0 : i32
    return %c0_i32, %c0_i32_0 : i32, i32
  }
  func.func @transform_2(%arg0: i32) -> (i32, i32) {
    %c0_i32 = arith.constant 0 : i32
    %c0_i32_0 = arith.constant 0 : i32
    %c0_i32_1 = arith.constant 0 : i32
    return %c0_i32, %c0_i32_0 : i32, i32
  }
  func.func @transform_3(%arg0: i32) -> (i32, i32) {
    %c0_i32 = arith.constant 0 : i32
    %c0_i32_0 = arith.constant 0 : i32
    %c0_i32_1 = arith.constant 0 : i32
    return %c0_i32, %c0_i32_0 : i32, i32
  }
  func.func @transform_4(%arg0: i32) -> (i32, i32) {
    %c0_i32 = arith.constant 0 : i32
    %c0_i32_0 = arith.constant 0 : i32
    %c0_i32_1 = arith.constant 0 : i32
    return %c0_i32, %c0_i32_0 : i32, i32
  }
  func.func @transform_5(%arg0: i32) -> (i32, i32) {
    %c0_i32 = arith.constant 0 : i32
    %c0_i32_0 = arith.constant 0 : i32
    %c0_i32_1 = arith.constant 0 : i32
    return %c0_i32, %c0_i32_0 : i32, i32
  }
  func.func @transform_6(%arg0: i32) -> (i32, i32) {
    %c0_i32 = arith.constant 0 : i32
    %c0_i32_0 = arith.constant 0 : i32
    %c0_i32_1 = arith.constant 0 : i32
    return %c0_i32, %c0_i32_0 : i32, i32
  }
}

</mosaic_0001>

<bundles_post_ra>
// kernel: tile.13
= control target key start
LH: loop header
LB: loop body
LE: loop exit
PB: predicated region body
PF: predicated region fallthrough
CT: control target
= control target key end

     0   :  { %s154_s0 = inlined_call_operand.vmem [shape: f32[8,8], index: 0, kind: input, shape index: {}]   ;;  %s155_s1 = inlined_call_operand.vmem [shape: f32[2,8,4,8], index: 1, kind: output, shape index: {}]  }
   0x1   :  { %v4_v0 = vld [vmem:[%s154_s0] ss:$0 sm:$0xff]  ;;  %v51_v1 = vld [vmem:[%s154_s0 + $0x1] ss:$0 sm:$0xff]  ;;  %v54_v2 = vld [vmem:[%s154_s0 + $0x2] ss:$0 sm:$0xff] }
   0x2   :  { %5 = vst [vmem:[%s155_s1] sm:$0xf] %v4_v0  ;;  %50 = vst [vmem:[%s155_s1 + $0x20] sm:$0xf] %v4_v0  ;;  %v57_v3 = vld [vmem:[%s154_s0 + $0x3] ss:$0 sm:$0xff] }
   0x3   :  { %52 = vst [vmem:[%s155_s1 + $0x4] sm:$0xf] %v51_v1  ;;  %53 = vst [vmem:[%s155_s1 + $0x24] sm:$0xf] %v51_v1  ;;  %v60_v4 = vld [vmem:[%s154_s0 + $0x4] ss:$0 sm:$0xff] }
   0x4   :  { %55 = vst [vmem:[%s155_s1 + $0x8] sm:$0xf] %v54_v2  ;;  %56 = vst [vmem:[%s155_s1 + $0x28] sm:$0xf] %v54_v2  ;;  %v63_v5 = vld [vmem:[%s154_s0 + $0x5] ss:$0 sm:$0xff] }
   0x5   :  { %58 = vst [vmem:[%s155_s1 + $0xc] sm:$0xf] %v57_v3  ;;  %59 = vst [vmem:[%s155_s1 + $0x2c] sm:$0xf] %v57_v3  ;;  %v66_v6 = vld [vmem:[%s154_s0 + $0x6] ss:$0 sm:$0xff] }
   0x6   :  { %61 = vst [vmem:[%s155_s1 + $0x10] sm:$0xf] %v60_v4  ;;  %62 = vst [vmem:[%s155_s1 + $0x30] sm:$0xf] %v60_v4  ;;  %v69_v7 = vld [vmem:[%s154_s0 + $0x7] ss:$0 sm:$0xff] }
   0x7   :  { %64 = vst [vmem:[%s155_s1 + $0x14] sm:$0xf] %v63_v5  ;;  %65 = vst [vmem:[%s155_s1 + $0x34] sm:$0xf] %v63_v5 }
   0x8   :  { %67 = vst [vmem:[%s155_s1 + $0x18] sm:$0xf] %v66_v6  ;;  %68 = vst [vmem:[%s155_s1 + $0x38] sm:$0xf] %v66_v6 }
   0x9   :  { %70 = vst [vmem:[%s155_s1 + $0x1c] sm:$0xf] %v69_v7  ;;  %71 = vst [vmem:[%s155_s1 + $0x3c] sm:$0xf] %v69_v7 }

// kernel: tile.14
= control target key start
LH: loop header
LB: loop body
LE: loop exit
PB: predicated region body
PF: predicated region fallthrough
CT: control target
= control target key end

     0   :  { %vm82_vm0 = vcmask 1047556   ;;  %vm84_vm1 = vcmask 64512   ;;  %s195_s9 = smov 24   ;;  %s196_s14 = smov 8   ;;  %vm103_vm2 = vcmask 261312   ;;  %vm124_vm3 = vcmask 195712   ;;  %s289_s0 = inlined_call_operand.vmem [shape: f32[2,8,4,8], index: 0, kind: input, shape index: {}]   ;;  %s290_s1 = inlined_call_operand.vmem [shape: f32[16,32], index: 1, kind: output, shape index: {}]  }
   0x1   :  { %v180_v0 = vld [vmem:[%s289_s0 + $0x1c] sm:$0xf]  ;;  %v181_v1 = vld [vmem:[%s289_s0 + $0x18] sm:$0xf]  ;;  %v182_v2 = vld [vmem:[%s289_s0 + $0x14] sm:$0xf] }
   0x2   :  { %48 = vst [vmem:[#allocation0 + $0x38] sm:$0xf] %v180_v0  ;;  %53 = vst [vmem:[#allocation0 + $0x30] sm:$0xf] %v181_v1  ;;  %v183_v3 = vld [vmem:[%s289_s0 + $0x10] sm:$0xf] }
   0x3   :  { %58 = vst [vmem:[#allocation0 + $0x28] sm:$0xf] %v182_v2  ;;  %v184_v4 = vld [vmem:[%s289_s0 + $0xc] sm:$0xf]  ;;  %v185_v5 = vld [vmem:[%s289_s0 + $0x8] sm:$0xf] }
   0x4   :  { %63 = vst [vmem:[#allocation0 + $0x20] sm:$0xf] %v183_v3  ;;  %68 = vst [vmem:[#allocation0 + $0x18] sm:$0xf] %v184_v4  ;;  %v186_v6 = vld [vmem:[%s289_s0 + $0x4] sm:$0xf] }
   0x5   :  { %73 = vst [vmem:[#allocation0 + $0x10] sm:$0xf] %v185_v5  ;;  %v78_v7 = vld [vmem:[%s289_s0] sm:$0xf]  ;;  %77 = vst [vmem:[#allocation0 + $0x8] sm:$0xf] %v186_v6 }
   0x6   :  { %79 = vst [vmem:[#allocation0] sm:$0xf] %v78_v7  ;;  %v172_v8 = vld [vmem:[%s289_s0 + $0x3c] sm:$0xf]  ;;  %v173_v9 = vld [vmem:[%s289_s0 + $0x38] sm:$0xf] }
   0x7   :  { %8 = vst [vmem:[#allocation0 + $0x78] sm:$0xf] %v172_v8  ;;  %13 = vst [vmem:[#allocation0 + $0x70] sm:$0xf] %v173_v9  ;;  %v174_v10 = vld [vmem:[%s289_s0 + $0x34] sm:$0xf] }
   0x8   :  { %v175_v11 = vld [vmem:[%s289_s0 + $0x30] sm:$0xf]  ;;  %v176_v12 = vld [vmem:[%s289_s0 + $0x2c] sm:$0xf]  ;;  %18 = vst [vmem:[#allocation0 + $0x68] sm:$0xf] %v174_v10 }
   0x9   :  { %23 = vst [vmem:[#allocation0 + $0x60] sm:$0xf] %v175_v11  ;;  %28 = vst [vmem:[#allocation0 + $0x58] sm:$0xf] %v176_v12  ;;  %v177_v13 = vld [vmem:[%s289_s0 + $0x28] sm:$0xf] }
   0xa   :  { %v178_v14 = vld [vmem:[%s289_s0 + $0x24] sm:$0xf]  ;;  %v179_v15 = vld [vmem:[%s289_s0 + $0x20] sm:$0xf]  ;;  %33 = vst [vmem:[#allocation0 + $0x50] sm:$0xf] %v177_v13 }
   0xb   :  { %38 = vst [vmem:[#allocation0 + $0x48] sm:$0xf] %v178_v14  ;;  %43 = vst [vmem:[#allocation0 + $0x40] sm:$0xf] %v179_v15  ;;  %s194_s0 = smov 16   ;;  %vm145_vm4 = vcmask 130112  }
   0xc   :  { %v119_v16 = vld [vmem:[#allocation0 + $0x2] ss:$8 sm:$0xf0]   ;;  %v98_v17 = vld [vmem:[#allocation0 + $0x3] ss:$8 sm:$0xf0]  }
   0xd   :  { %v117_v18 = vld [vmem:[#allocation0 + $0x2] ss:$8 sm:$0xf]   ;;  %v96_v19 = vld [vmem:[#allocation0 + $0x3] ss:$8 sm:$0xf]  }
   0xe   :  { %v121_v20 = vsel %vm82_vm0, %v119_v16, %v117_v18  ;;  %v100_v21 = vsel %vm82_vm0, %v98_v17, %v96_v19  ;;  %v138_v24 = vld [vmem:[#allocation0 + $0x1] ss:$8 sm:$0xf]   ;;  %v80_v32 = vld [vmem:[#allocation0] ss:$8 sm:$0xf]  }
   0xf   :  { %122 = vrot.lane.b32.xlu1 %v121_v20, %s194_s0  ;;  %101 = vrot.lane.b32.xlu0 %v100_v21, %s195_s9  ;;  %v140_v25 = vld [vmem:[#allocation0 + $0x1] ss:$8 sm:$0xf0]   ;;  %v81_v33 = vld [vmem:[#allocation0] ss:$8 sm:$0xf0]  }
  0x10   :  { %v129_v22 = vld [vmem:[#allocation0 + $0x42] ss:$8 sm:$0xf0]   ;;  %v108_v23 = vld [vmem:[#allocation0 + $0x43] ss:$8 sm:$0xf0]   ;;  %v83_v34 = vsel %vm82_vm0, %v81_v33, %v80_v32  ;;  %v142_v38 = vsel %vm82_vm0, %v140_v25, %v138_v24 }
  0x11   :  { %v150_v31 = vld [vmem:[#allocation0 + $0x41] ss:$8 sm:$0xf0]   ;;  %v89_v36 = vld [vmem:[#allocation0 + $0x40] ss:$8 sm:$0xf0]  }
  0x12   :  { %v127_v26 = vld [vmem:[#allocation0 + $0x42] ss:$8 sm:$0xf]   ;;  %v106_v27 = vld [vmem:[#allocation0 + $0x43] ss:$8 sm:$0xf]  }
  0x13   :  { %v131_v28 = vsel %vm82_vm0, %v129_v22, %v127_v26  ;;  %v110_v29 = vsel %vm82_vm0, %v108_v23, %v106_v27  ;;  %v148_v30 = vld [vmem:[#allocation0 + $0x41] ss:$8 sm:$0xf]   ;;  %v87_v35 = vld [vmem:[#allocation0 + $0x40] ss:$8 sm:$0xf]  }
  0x14   :  { %132 = vrot.lane.b32.xlu1 %v131_v28, %s194_s0  ;;  %111 = vrot.lane.b32.xlu0 %v110_v29, %s195_s9  ;;  %v152_v37 = vsel %vm82_vm0, %v150_v31, %v148_v30  ;;  %85 = vst.msk [vmem:[%s290_s1] sm:$0xff] %vm84_vm1, %v83_v34   ;;  %v91_v39 = vsel %vm82_vm0, %v89_v36, %v87_v35 }
  0x15   :  { %187 = vst.msk [vmem:[%s290_s1 + $0x8] sm:$0xff] %vm84_vm1, %v91_v39  }
  0x18   :  { %153 = vrot.lane.b32.xlu1 %v152_v37, %s196_s14  ;;  %143 = vrot.lane.b32.xlu0 %v142_v38, %s196_s14 }
  0x81   :  { %v123_v40 = vpop.permute.xlu1 %122   ;;  %v102_v41 = vpop.permute.xlu0 %101  }
  0x82   :  { %104 = vst.msk [vmem:[%s290_s1] sm:$0xff] %vm103_vm2, %v102_v41  }
  0x83   :  { %125 = vst.msk [vmem:[%s290_s1] sm:$0xff] %vm124_vm3, %v123_v40  }
  0x86   :  { %v133_v42 = vpop.permute.xlu1 %132   ;;  %v112_v43 = vpop.permute.xlu0 %111  }
  0x87   :  { %188 = vst.msk [vmem:[%s290_s1 + $0x8] sm:$0xff] %vm103_vm2, %v112_v43  }
  0x88   :  { %189 = vst.msk [vmem:[%s290_s1 + $0x8] sm:$0xff] %vm124_vm3, %v133_v42  }
  0x8a   :  { %v154_v44 = vpop.permute.xlu1 %153   ;;  %v144_v45 = vpop.permute.xlu0 %143  }
  0x8b   :  { %190 = vst.msk [vmem:[%s290_s1 + $0x8] sm:$0xff] %vm145_vm4, %v154_v44   ;;  %146 = vst.msk [vmem:[%s290_s1] sm:$0xff] %vm145_vm4, %v144_v45  }

// kernel: attention_forward.1
= control target key start
LH: loop header
LB: loop body
LE: loop exit
PB: predicated region body
PF: predicated region fallthrough
CT: control target
= control target key end

     0   :  { %vm36_vm0 = vcmask 261120   ;;  %v1990_v20 = vmov 0.0   ;;  %vm132_vm1 = vcmask 523264   ;;  %s1991_s25 = smov 64   ;;  %vm1992_vm2 = vmmov 0   ;;  %s1993_s29 = smov 88   ;;  %s2287_s1 = inlined_call_operand.vmem [shape: f32[32,96], index: 1, kind: input, shape index: {}]   ;;  %s2288_s0 = inlined_call_operand.vmem [shape: f32[16,32], index: 0, kind: input, shape index: {}]   ;;  %s2289_s5 = inlined_call_operand.vmem [shape: f32[112,64], index: 5, kind: input, shape index: {}]   ;;  %s2290_s2 = inlined_call_operand.vmem [shape: f32[1,96], index: 2, kind: input, shape index: {}]   ;;  %s2291_s3 = inlined_call_operand.vmem [shape: f32[32,32], index: 3, kind: input, shape index: {}]   ;;  %s2292_s4 = inlined_call_operand.vmem [shape: f32[1,32], index: 4, kind: input, shape index: {}]   ;;  %s2293_s6 = inlined_call_operand.vmem [shape: f32[16,128], index: 6, kind: output, shape index: {}]  }
   0x1   :  { %v25_v0 = vld [vmem:[%s2287_s1] sm:$0xff]  ;;  %v26_v1 = vld [vmem:[%s2287_s1 + $0x8] sm:$0xff]  ;;  %v27_v2 = vld [vmem:[%s2287_s1 + $0x10] sm:$0xff]  ;;  %s1994_s30 = smov 96   ;;  %s1995_s7 = smov 120   ;;  %vm223_vm3 = vcmask 64512  }
   0x2   :  { %v1910_v3 = vpack.c.bf16 %v26_v1, %v25_v0  ;;  %v28_v4 = vld [vmem:[%s2287_s1 + $0x18] sm:$0xff]  ;;  %v23_v5 = vld [vmem:[%s2288_s0] sm:$0xff]  ;;  %v119_v8 = vld [vmem:[%s2289_s5 + $0x8] sm:$0xff]  ;;  %s1996_s8 = smov 80   ;;  %s1997_s14 = smov 72   ;;  %vm561_vm4 = vcmask 130112  }
   0x3   :  { %v1914_v6 = vpack.c.bf16 %v28_v4, %v27_v2  ;;  %1797 = vmatprep.mubr.msk.f32.mxu0 %vm36_vm0, %v23_v5  ;;  %v118_v7 = vld [vmem:[%s2289_s5] sm:$0xff]  ;;  %v120_v9 = vld [vmem:[%s2289_s5 + $0x10] sm:$0xff]  ;;  %v121_v11 = vld [vmem:[%s2289_s5 + $0x18] sm:$0xff]  ;;  %s1998_s15 = smov 112   ;;  %s1999_s16 = smov 104   ;;  %vm735_vm5 = vcmask 195712  }
   0x4   :  { %1911 = vmatprep.subr.bf16.mxu0 %v1910_v3  ;;  %v1918_v10 = vpack.c.bf16 %v119_v8, %v118_v7  ;;  %v1922_v12 = vpack.c.bf16 %v121_v11, %v120_v9  ;;  %v122_v13 = vld [vmem:[%s2289_s5 + $0x20] sm:$0xff]  ;;  %v123_v14 = vld [vmem:[%s2289_s5 + $0x28] sm:$0xff]  ;;  %v124_v17 = vld [vmem:[%s2289_s5 + $0x30] sm:$0xff]  ;;  %s2001_s19 = smov 40   ;;  %s2002_s20 = smov 56   ;;  %vm909_vm6 = vcmask 261312  }
   0x5   :  { %1913 = vmatpush3.bf16.msra.mxu0 %v1910_v3  ;;  %v1926_v15 = vpack.c.bf16 %v123_v14, %v122_v13  ;;  %v24_v16 = vld [vmem:[%s2288_s0 + $0x8] sm:$0xff]  ;;  %v125_v18 = vld [vmem:[%s2289_s5 + $0x38] sm:$0xff]  ;;  %v1703_v21 = vld [vmem:[%s2290_s2] ss:$0 sm:$0xff]  ;;  %s2003_s21 = smov 8   ;;  %s2004_s22 = smov 16  }
   0x6   :  { %1915 = vmatprep.subr.bf16.mxu0 %v1914_v6  ;;  %1919 = vmatprep.subr.bf16.mxu1 %v1918_v10  ;;  %v1930_v19 = vpack.c.bf16 %v125_v18, %v124_v17  ;;  %v126_v27 = vld [vmem:[%s2289_s5 + $0x40] sm:$0xff]  ;;  %v128_v28 = vld [vmem:[%s2289_s5 + $0x50] sm:$0xff]  ;;  %v129_v40 = vld [vmem:[%s2289_s5 + $0x58] sm:$0xff]  ;;  %s2005_s23 = smov 24   ;;  %vm1694_vm7 = vcmask 785408  }
   0x7   :  { %1921 = vmatpush3.bf16.msra.mxu1 %v1918_v10  ;;  %v2122_v35 = vld [vmem:[%s2289_s5 + $0x60] sm:$0xff]  ;;  %v127_v41 = vld [vmem:[%s2289_s5 + $0x48] sm:$0xff] }
   0x8   :  { %1923 = vmatprep.subr.bf16.mxu1 %v1922_v12  ;;  %v131_v18 = vld [vmem:[%s2289_s5 + $0x68] sm:$0xff]  ;;  %s2000_s5 = smov 48  }
   0x9   :  { %1917 = vmatpush3.bf16.msra.mxu0 %v1914_v6 }
   0xa   :  { %1824 = vmatprep.subr.mxu0 %v1990_v20 }
   0xb   :  { %1925 = vmatpush3.bf16.msra.mxu1 %v1922_v12 }
   0xc   :  { %1798 = vmatmul.mubr.msk.f32.vlgmr.msra.gmra.mrb[0].mxu0 %vm36_vm0, %v24_v16  ;;  %1927 = vmatprep.subr.bf16.mxu1 %v1926_v15 }
   0xd   :  { %1826 = vmatprep.mubr.msk.f32.mxu0 %vm1992_vm2, %v1990_v20 }
   0xf   :  { %1929 = vmatpush3.bf16.msra.mxu1 %v1926_v15 }
  0x10   :  { %1931 = vmatprep.subr.bf16.mxu1 %v1930_v19 }
  0x13   :  { %1933 = vmatpush3.bf16.msra.mxu1 %v1930_v19 }
  0x14   :  { %1819 = vmatprep.subr.mxu1 %v1990_v20 }
  0xdf   :  { %v1799_v22 = vpop.f32.mrb[0].mxu0 }
  0xe0   :  { %v109_v23 = vpop.f32.mrb[1].mxu0  ;;  %v2092_v25 = vadd.f32 %v1799_v22, %v1703_v21 }
  0xe1   :  { %v2090_v24 = vadd.f32 %v1703_v21, %v109_v23 }
  0xe2   :  { %v215_v43 = vmul.f32 %v127_v41, %v2092_v25 }
  0xe3   :  { %312 = vrot.lane.b32.xlu1 %v2090_v24, %s1991_s25  ;;  %1816 = vmatprep.mubr.msk.f32.mxu1 %vm132_vm1, %v2090_v24  ;;  %v214_v31 = vmul.f32 %v126_v27, %v2090_v24 }
  0xe4   :  { %1817 = vmatmul.mubr.msk.f32.vlgmr.msra.gmra.mrb[0].mxu1 %vm132_vm1, %v2092_v25 }
  0xe5   :  { %1821 = vmatprep.mubr.msk.f32.mxu1 %vm1992_vm2, %v1990_v20 }
 0x155   :  { %v313_v26 = vpop.permute.xlu1 %312 }
 0x156   :  { %1825 = vmatpush3.msra.mxu0 %v313_v26 }
 0x157   :  { %1829 = vmatprep.subr.mxu0 %v1990_v20 }
 0x1b7   :  { %v1818_v29 = vpop.f32.mrb[0].mxu1 }
 0x1b8   :  { %v205_v30 = vpop.f32.mrb[1].mxu1  ;;  %v217_v42 = vmul.f32 %v1818_v29, %v129_v40 }
 0x1b9   :  { %v216_v32 = vmul.f32 %v205_v30, %v128_v28 }
 0x1ba   :  { %v219_v44 = vadd.f32 %v217_v42, %v215_v43 }
 0x1bb   :  { %v218_v33 = vadd.f32 %v216_v32, %v214_v31 }
 0x1bd   :  { %391 = vrot.lane.b32.xlu1 %v218_v33, %s1993_s29  ;;  %221 = vrot.lane.b32.xlu0 %v218_v33, %s1994_s30 }
 0x1c1   :  { %389 = vrot.lane.b32.xlu1 %v218_v33, %s1995_s7 }
 0x1c5   :  { %565 = vrot.lane.b32.xlu1 %v218_v33, %s1996_s8 }
 0x22f   :  { %v222_v34 = vpop.permute.xlu0 %221  ;;  %v392_v50 = vpop.permute.xlu1 %391 }
 0x230   :  { %1820 = vmatpush3.xpose.msk.msra.mxu1 %vm223_vm3, %v222_v34 }
 0x231   :  { %1834 = vmatprep.subr.mxu1 %v1990_v20 }
 0x233   :  { %1822 = vmatmul.mubr.msk.f32.vlgmr.msra.gmra.mrb[2].mxu1 %vm223_vm3, %v218_v33  ;;  %v390_v51 = vpop.permute.xlu1 %389 }
 0x234   :  { %1836 = vmatprep.mubr.msk.f32.mxu1 %vm1992_vm2, %v1990_v20 }
 0x237   :  { %v566_v52 = vpop.permute.xlu1 %565 }
 0x306   :  { %v294_v36 = vpop.f32.mrb[2].mxu1 }
 0x307   :  { %v295_v37 = vadd.f32 %v294_v36, %v2122_v35  ;;  %v1823_v38 = vpop.f32.mrb[3].mxu1 }
 0x309   :  { %v298_v39 = vsel %vm223_vm3, %v295_v37, -inf }
 0x30a   :  { %299 = vmax.xlane.f32.xlu0 %v298_v39 }
 0x320   :  { %739 = vrot.lane.b32.xlu0 %v218_v33, %s1997_s14 }
 0x324   :  { %1252 = vrot.lane.b32.xlu0 %v219_v44, %s1998_s15 }
 0x328   :  { %1425 = vrot.lane.b32.xlu0 %v219_v44, %s1999_s16 }
 0x397   :  { %v300_v45 = vpop.xlane.xlu0 %299 }
 0x398   :  { %v301_v46 = vsub.f32 %v295_v37, %v300_v45 }
 0x39a   :  { %v302_v47 = vmul.f32 1.442695, %v301_v46 }
 0x39b   :  { %v740_v63 = vpop.permute.xlu0 %739 }
 0x39c   :  { %1958 = vpow2.f32 %v302_v47 }
 0x39f   :  { %v1253_v2 = vpop.permute.xlu0 %1252 }
 0x3a3   :  { %v1426_v4 = vpop.permute.xlu0 %1425 }
 0x3a6   :  { %v1959_v48 = vpop.eup %1958 }
 0x3a7   :  { %v304_v49 = vsel %vm223_vm3, %v1959_v48, 0.0 }
 0x3a8   :  { %305 = vadd.xlane.f32.xlu1 %v304_v49 }
 0x3b9   :  { %563 = vrot.lane.b32.xlu1 %v218_v33, %s1998_s15 }
 0x3bd   :  { %737 = vrot.lane.b32.xlu1 %v218_v33, %s1999_s16 }
 0x3c1   :  { %912 = vrot.lane.b32.xlu1 %v219_v44, %s1994_s30 }
 0x3c5   :  { %1081 = vrot.lane.b32.xlu1 %v219_v44, %s1993_s29 }
 0x3c9   :  { %1079 = vrot.lane.b32.xlu1 %v219_v44, %s1995_s7 }
 0x3cd   :  { %1254 = vrot.lane.b32.xlu1 %v219_v44, %s1996_s8 }
 0x3d1   :  { %1427 = vrot.lane.b32.xlu1 %v219_v44, %s1997_s14 }
 0x435   :  { %v306_v53 = vpop.xlane.xlu1 %305 }
 0x436   :  { %1960 = vrcp.f32 %v306_v53 }
 0x439   :  { %v564_v54 = vpop.permute.xlu1 %563 }
 0x43d   :  { %v738_v58 = vpop.permute.xlu1 %737 }
 0x440   :  { %v1961_v55 = vpop.eup %1960 }
 0x441   :  { %v308_v56 = vmul.f32 %v1961_v55, %v306_v53  ;;  %v913_v61 = vpop.permute.xlu1 %912 }
 0x443   :  { %v309_v57 = vsub.f32 2.0, %v308_v56 }
 0x445   :  { %v310_v59 = vmul.f32 %v1961_v55, %v309_v57  ;;  %v1082_v62 = vpop.permute.xlu1 %1081 }
 0x447   :  { %v311_v60 = vmul.f32 %v1959_v48, %v310_v59 }
 0x449   :  { %1827 = vmatmul.mubr.msk.f32.vlgmr.msra.gmra.mrb[2].mxu0 %vm223_vm3, %v311_v60  ;;  %v1080_v0 = vpop.permute.xlu1 %1079 }
 0x44a   :  { %1830 = vmatpush3.xpose.msk.msra.mxu0 %vm223_vm3, %v392_v50  ;;  %1831 = vmatprep.mubr.msk.f32.mxu0 %vm1992_vm2, %v1990_v20 }
 0x44b   :  { %1839 = vmatprep.subr.mxu0 %v1990_v20 }
 0x44d   :  { %1832 = vmatmul.mubr.msk.f32.vlgmr.msra.gmra.mrb[4].mxu0 %vm223_vm3, %v390_v51  ;;  %v1255_v1 = vpop.permute.xlu1 %1254 }
 0x44e   :  { %1840 = vmatpush3.xpose.msk.msra.mxu0 %vm223_vm3, %v566_v52  ;;  %1841 = vmatprep.mubr.msk.f32.mxu0 %vm1992_vm2, %v1990_v20 }
 0x44f   :  { %1849 = vmatprep.subr.mxu0 %v1990_v20 }
 0x451   :  { %1842 = vmatmul.mubr.msk.f32.vlgmr.msra.gmra.mrb[6].mxu0 %vm223_vm3, %v564_v54  ;;  %v1428_v3 = vpop.permute.xlu1 %1427 }
 0x452   :  { %1850 = vmatpush3.xpose.msk.msra.mxu0 %vm223_vm3, %v740_v63  ;;  %1851 = vmatprep.mubr.msk.f32.mxu0 %vm1992_vm2, %v1990_v20 }
 0x453   :  { %1859 = vmatprep.subr.mxu0 %v1990_v20 }
 0x455   :  { %1852 = vmatmul.mubr.msk.f32.vlgmr.msra.gmra.mrb[8].mxu0 %vm223_vm3, %v738_v58 }
 0x456   :  { %1860 = vmatpush3.xpose.msk.msra.mxu0 %vm223_vm3, %v913_v61  ;;  %1861 = vmatprep.mubr.msk.f32.mxu0 %vm1992_vm2, %v1990_v20 }
 0x457   :  { %1869 = vmatprep.subr.mxu0 %v1990_v20 }
 0x459   :  { %1862 = vmatmul.mubr.msk.f32.vlgmr.msra.gmra.mrb[10].mxu0 %vm223_vm3, %v219_v44 }
 0x45a   :  { %1870 = vmatpush3.xpose.msk.msra.mxu0 %vm223_vm3, %v1082_v62  ;;  %1871 = vmatprep.mubr.msk.f32.mxu0 %vm1992_vm2, %v1990_v20 }
 0x45b   :  { %1879 = vmatprep.subr.mxu0 %v1990_v20 }
 0x45d   :  { %1872 = vmatmul.mubr.msk.f32.vlgmr.msra.gmra.mrb[12].mxu0 %vm223_vm3, %v1080_v0 }
 0x45e   :  { %1880 = vmatpush3.xpose.msk.msra.mxu0 %vm223_vm3, %v1255_v1  ;;  %1881 = vmatprep.mubr.msk.f32.mxu0 %vm1992_vm2, %v1990_v20 }
 0x45f   :  { %1889 = vmatprep.subr.mxu0 %v1990_v20 }
 0x461   :  { %1882 = vmatmul.mubr.msk.f32.vlgmr.msra.gmra.mrb[14].mxu0 %vm223_vm3, %v1253_v2 }
 0x462   :  { %1890 = vmatpush3.xpose.msk.msra.mxu0 %vm223_vm3, %v1428_v3  ;;  %1891 = vmatprep.mubr.msk.f32.mxu0 %vm1992_vm2, %v1990_v20 }
 0x465   :  { %1892 = vmatmul.mubr.msk.f32.vlgmr.msra.gmra.mrb[16].mxu0 %vm223_vm3, %v1426_v4 }
 0x51c   :  { %v384_v5 = vpop.f32.mrb[2].mxu0 }
 0x51d   :  { %388 = vst.msk [vmem:[#allocation2] sm:$0xff] %vm223_vm3, %v384_v5  ;;  %v1828_v6 = vpop.f32.mrb[3].mxu0 }
 0x520   :  { %v463_v7 = vpop.f32.mrb[4].mxu0 }
 0x521   :  { %v464_v8 = vadd.f32 %v463_v7, %v2122_v35  ;;  %v1833_v9 = vpop.f32.mrb[5].mxu0 }
 0x523   :  { %v467_v10 = vsel %vm223_vm3, %v464_v8, -inf }
 0x524   :  { %468 = vmax.xlane.f32.xlu1 %v467_v10  ;;  %v637_v11 = vpop.f32.mrb[6].mxu0 }
 0x525   :  { %v638_v12 = vadd.f32 %v637_v11, %v2122_v35  ;;  %v1843_v13 = vpop.f32.mrb[7].mxu0 }
 0x527   :  { %v641_v14 = vsel %vm223_vm3, %v638_v12, -inf }
 0x528   :  { %642 = vmax.xlane.f32.xlu0 %v641_v14  ;;  %v811_v15 = vpop.f32.mrb[8].mxu0 }
 0x529   :  { %v812_v16 = vadd.f32 %v811_v15, %v2122_v35  ;;  %v1853_v17 = vpop.f32.mrb[9].mxu0 }
 0x52b   :  { %v815_v19 = vsel %vm223_vm3, %v812_v16, -inf }
 0x52c   :  { %816 = vmax.xlane.f32.xlu0 %v815_v19  ;;  %v984_v21 = vpop.f32.mrb[10].mxu0 }
 0x52d   :  { %v985_v22 = vadd.f32 %v984_v21, %v131_v18  ;;  %v1863_v23 = vpop.f32.mrb[11].mxu0 }
 0x52f   :  { %v988_v26 = vsel %vm223_vm3, %v985_v22, -inf }
 0x530   :  { %989 = vmax.xlane.f32.xlu1 %v988_v26  ;;  %v1153_v27 = vpop.f32.mrb[12].mxu0 }
 0x531   :  { %v1154_v28 = vadd.f32 %v1153_v27, %v131_v18  ;;  %v1873_v29 = vpop.f32.mrb[13].mxu0 }
 0x533   :  { %v1157_v30 = vsel %vm223_vm3, %v1154_v28, -inf }
 0x534   :  { %1158 = vmax.xlane.f32.xlu0 %v1157_v30  ;;  %v1326_v31 = vpop.f32.mrb[14].mxu0 }
 0x535   :  { %v1327_v32 = vadd.f32 %v1326_v31, %v131_v18  ;;  %v1883_v33 = vpop.f32.mrb[15].mxu0 }
 0x537   :  { %v1330_v34 = vsel %vm223_vm3, %v1327_v32, -inf }
 0x538   :  { %1331 = vmax.xlane.f32.xlu1 %v1330_v34  ;;  %v1499_v35 = vpop.f32.mrb[16].mxu0 }
 0x539   :  { %v1500_v36 = vadd.f32 %v1499_v35, %v131_v18  ;;  %v1893_v37 = vpop.f32.mrb[17].mxu0 }
 0x53b   :  { %v1503_v38 = vsel %vm223_vm3, %v1500_v36, -inf }
 0x53c   :  { %1504 = vmax.xlane.f32.xlu0 %v1503_v38 }
 0x5b1   :  { %v469_v39 = vpop.xlane.xlu1 %468 }
 0x5b2   :  { %v470_v40 = vsub.f32 %v464_v8, %v469_v39 }
 0x5b4   :  { %v471_v41 = vmul.f32 1.442695, %v470_v40 }
 0x5b5   :  { %v643_v42 = vpop.xlane.xlu0 %642 }
 0x5b6   :  { %1962 = vpow2.f32 %v471_v41  ;;  %v644_v43 = vsub.f32 %v638_v12, %v643_v42 }
 0x5b8   :  { %v645_v44 = vmul.f32 1.442695, %v644_v43 }
 0x5b9   :  { %v817_v49 = vpop.xlane.xlu0 %816 }
 0x5ba   :  { %1964 = vpow2.f32 %v645_v44  ;;  %v818_v51 = vsub.f32 %v812_v16, %v817_v49 }
 0x5bc   :  { %v819_v55 = vmul.f32 1.442695, %v818_v51 }
 0x5bd   :  { %v990_v50 = vpop.xlane.xlu1 %989 }
 0x5be   :  { %v991_v52 = vsub.f32 %v985_v22, %v990_v50  ;;  %1966 = vpow2.f32 %v819_v55 }
 0x5c0   :  { %v2187_v45 = vpop.eup %1962  ;;  %v992_v57 = vmul.f32 1.442695, %v991_v52 }
 0x5c1   :  { %v473_v46 = vsel %vm223_vm3, %v2187_v45, 0.0  ;;  %v1159_v53 = vpop.xlane.xlu0 %1158 }
 0x5c2   :  { %474 = vadd.xlane.f32.xlu1 %v473_v46  ;;  %v1160_v56 = vsub.f32 %v1154_v28, %v1159_v53  ;;  %1968 = vpow2.f32 %v992_v57 }
 0x5c4   :  { %v2191_v47 = vpop.eup %1964  ;;  %v1161_v59 = vmul.f32 1.442695, %v1160_v56 }
 0x5c5   :  { %v647_v48 = vsel %vm223_vm3, %v2191_v47, 0.0  ;;  %v1332_v54 = vpop.xlane.xlu1 %1331 }
 0x5c6   :  { %648 = vadd.xlane.f32.xlu0 %v647_v48  ;;  %v1333_v58 = vsub.f32 %v1327_v32, %v1332_v54  ;;  %1970 = vpow2.f32 %v1161_v59 }
 0x5c8   :  { %v1334_v60 = vmul.f32 1.442695, %v1333_v58  ;;  %v2200_v61 = vpop.eup %1966 }
 0x5c9   :  { %v821_v1 = vsel %vm223_vm3, %v2200_v61, 0.0  ;;  %v1505_v5 = vpop.xlane.xlu0 %1504 }
 0x5ca   :  { %1972 = vpow2.f32 %v1334_v60  ;;  %v1506_v6 = vsub.f32 %v1500_v36, %v1505_v5 }
 0x5cc   :  { %v2202_v62 = vpop.eup %1968  ;;  %v1507_v7 = vmul.f32 1.442695, %v1506_v6 }
 0x5cd   :  { %v994_v0 = vsel %vm223_vm3, %v2202_v62, 0.0 }
 0x5ce   :  { %1974 = vpow2.f32 %v1507_v7 }
 0x5d0   :  { %v2204_v63 = vpop.eup %1970 }
 0x5d1   :  { %v1163_v4 = vsel %vm223_vm3, %v2204_v63, 0.0 }
 0x5d3   :  { %655 = vrot.lane.b32.xlu1 %v2090_v24, %s2000_s5 }
 0x5d4   :  { %v2210_v2 = vpop.eup %1972 }
 0x5d5   :  { %v1336_v3 = vsel %vm223_vm3, %v2210_v2, 0.0 }
 0x5d7   :  { %829 = vrot.lane.b32.xlu1 %v2090_v24, %s2001_s19 }
 0x5d8   :  { %v2221_v8 = vpop.eup %1974 }
 0x5d9   :  { %v1509_v9 = vsel %vm223_vm3, %v2221_v8, 0.0 }
 0x5dc   :  { %481 = vrot.lane.b32.xlu0 %v2090_v24, %s2002_s20 }
 0x5fb   :  { %995 = vadd.xlane.f32.xlu0 %v994_v0  ;;  %822 = vadd.xlane.f32.xlu1 %v821_v1 }
 0x5ff   :  { %1337 = vadd.xlane.f32.xlu0 %v1336_v3  ;;  %1164 = vadd.xlane.f32.xlu1 %v1163_v4 }
 0x610   :  { %1171 = vrot.lane.b32.xlu1 %v2092_v25, %s2002_s20 }
 0x615   :  { %1002 = vrot.lane.b32.xlu0 %v2092_v25, %s1991_s25 }
 0x619   :  { %1344 = vrot.lane.b32.xlu0 %v2092_v25, %s2000_s5 }
 0x634   :  { %1510 = vadd.xlane.f32.xlu1 %v1509_v9  ;;  %v1600_v9 = vld [vmem:[%s2291_s3] sm:$0xff] }
 0x645   :  { %1517 = vrot.lane.b32.xlu1 %v2092_v25, %s2001_s19 }
 0x64f   :  { %v475_v10 = vpop.xlane.xlu1 %474 }
 0x650   :  { %1976 = vrcp.f32 %v475_v10 }
 0x653   :  { %v649_v11 = vpop.xlane.xlu0 %648  ;;  %v656_v21 = vpop.permute.xlu1 %655 }
 0x654   :  { %1978 = vrcp.f32 %v649_v11 }
 0x657   :  { %v482_v12 = vpop.permute.xlu0 %481  ;;  %v830_v27 = vpop.permute.xlu1 %829 }
 0x658   :  { %1835 = vmatpush3.msra.mxu1 %v482_v12  ;;  %v1602_v12 = vld [vmem:[%s2291_s3 + $0x10] sm:$0xff] }
 0x659   :  { %1844 = vmatprep.subr.mxu1 %v1990_v20 }
 0x65a   :  { %v1977_v13 = vpop.eup %1976 }
 0x65b   :  { %v477_v14 = vmul.f32 %v1977_v13, %v475_v10  ;;  %v1601_v10 = vld [vmem:[%s2291_s3 + $0x8] sm:$0xff] }
 0x65d   :  { %v478_v15 = vsub.f32 2.0, %v477_v14 }
 0x65e   :  { %v1979_v16 = vpop.eup %1978 }
 0x65f   :  { %v479_v17 = vmul.f32 %v1977_v13, %v478_v15  ;;  %v651_v18 = vmul.f32 %v1979_v16, %v649_v11  ;;  %v1934_v11 = vpack.c.bf16 %v1601_v10, %v1600_v9  ;;  %v1603_v13 = vld [vmem:[%s2291_s3 + $0x18] sm:$0xff] }
 0x660   :  { %v1938_v14 = vpack.c.bf16 %v1603_v13, %v1602_v12 }
 0x661   :  { %v480_v19 = vmul.f32 %v2187_v45, %v479_v17  ;;  %v652_v22 = vsub.f32 2.0, %v651_v18  ;;  %1935 = vmatprep.subr.bf16.mxu0 %v1934_v11 }
 0x662   :  { %1937 = vmatpush3.bf16.msra.mxu0 %v1934_v11 }
 0x663   :  { %v653_v23 = vmul.f32 %v1979_v16, %v652_v22  ;;  %1837 = vmatmul.mubr.msk.f32.vlgmr.msra.gmra.mrb[4].mxu1 %vm223_vm3, %v480_v19  ;;  %1939 = vmatprep.subr.bf16.mxu0 %v1938_v14 }
 0x664   :  { %1845 = vmatpush3.msra.mxu1 %v656_v21  ;;  %1846 = vmatprep.mubr.msk.f32.mxu1 %vm1992_vm2, %v1990_v20 }
 0x665   :  { %v654_v26 = vmul.f32 %v2191_v47, %v653_v23  ;;  %1854 = vmatprep.subr.mxu1 %v1990_v20 }
 0x666   :  { %1941 = vmatpush3.bf16.msra.mxu0 %v1938_v14 }
 0x667   :  { %1847 = vmatmul.mubr.msk.f32.vlgmr.msra.gmra.mrb[6].mxu1 %vm223_vm3, %v654_v26 }
 0x668   :  { %1855 = vmatpush3.msra.mxu1 %v830_v27  ;;  %1856 = vmatprep.mubr.msk.f32.mxu1 %vm1992_vm2, %v1990_v20 }
 0x669   :  { %1864 = vmatprep.subr.mxu1 %v1990_v20 }
 0x688   :  { %v823_v28 = vpop.xlane.xlu1 %822  ;;  %v996_v29 = vpop.xlane.xlu0 %995 }
 0x689   :  { %1980 = vrcp.f32 %v823_v28 }
 0x68a   :  { %1982 = vrcp.f32 %v996_v29 }
 0x68c   :  { %v1165_v30 = vpop.xlane.xlu1 %1164  ;;  %v1338_v31 = vpop.xlane.xlu0 %1337 }
 0x68d   :  { %1984 = vrcp.f32 %v1165_v30 }
 0x68e   :  { %1986 = vrcp.f32 %v1338_v31 }
 0x690   :  { %v1003_v46 = vpop.permute.xlu0 %1002  ;;  %v1172_v50 = vpop.permute.xlu1 %1171 }
 0x693   :  { %v1981_v32 = vpop.eup %1980 }
 0x694   :  { %v1983_v33 = vpop.eup %1982  ;;  %v825_v34 = vmul.f32 %v1981_v32, %v823_v28  ;;  %v1345_v53 = vpop.permute.xlu0 %1344  ;;  %v1732_v28 = vld [vmem:[%s2292_s4] ss:$0 sm:$0xff] }
 0x695   :  { %v998_v35 = vmul.f32 %v1983_v33, %v996_v29 }
 0x696   :  { %v826_v36 = vsub.f32 2.0, %v825_v34 }
 0x697   :  { %v1985_v37 = vpop.eup %1984  ;;  %v999_v38 = vsub.f32 2.0, %v998_v35 }
 0x698   :  { %v1987_v39 = vpop.eup %1986  ;;  %v827_v40 = vmul.f32 %v1981_v32, %v826_v36  ;;  %v1167_v41 = vmul.f32 %v1985_v37, %v1165_v30 }
 0x699   :  { %v1000_v43 = vmul.f32 %v1983_v33, %v999_v38  ;;  %v1340_v45 = vmul.f32 %v1987_v39, %v1338_v31 }
 0x69a   :  { %v828_v42 = vmul.f32 %v2200_v61, %v827_v40  ;;  %v1168_v44 = vsub.f32 2.0, %v1167_v41 }
 0x69b   :  { %v1001_v47 = vmul.f32 %v2202_v62, %v1000_v43  ;;  %v1341_v49 = vsub.f32 2.0, %v1340_v45 }
 0x69c   :  { %1857 = vmatmul.mubr.msk.f32.vlgmr.msra.gmra.mrb[8].mxu1 %vm223_vm3, %v828_v42  ;;  %v1169_v48 = vmul.f32 %v1985_v37, %v1168_v44 }
 0x69d   :  { %1865 = vmatpush3.msra.mxu1 %v1003_v46  ;;  %1866 = vmatprep.mubr.msk.f32.mxu1 %vm1992_vm2, %v1990_v20  ;;  %v1342_v52 = vmul.f32 %v1987_v39, %v1341_v49 }
 0x69e   :  { %1874 = vmatprep.subr.mxu1 %v1990_v20  ;;  %v1170_v51 = vmul.f32 %v2204_v63, %v1169_v48 }
 0x69f   :  { %v1343_v54 = vmul.f32 %v2210_v2, %v1342_v52 }
 0x6a0   :  { %1867 = vmatmul.mubr.msk.f32.vlgmr.msra.gmra.mrb[10].mxu1 %vm223_vm3, %v1001_v47 }
 0x6a1   :  { %1875 = vmatpush3.msra.mxu1 %v1172_v50  ;;  %1876 = vmatprep.mubr.msk.f32.mxu1 %vm1992_vm2, %v1990_v20 }
 0x6a2   :  { %1884 = vmatprep.subr.mxu1 %v1990_v20 }
 0x6a4   :  { %1877 = vmatmul.mubr.msk.f32.vlgmr.msra.gmra.mrb[12].mxu1 %vm223_vm3, %v1170_v51 }
 0x6a5   :  { %1885 = vmatpush3.msra.mxu1 %v1345_v53  ;;  %1886 = vmatprep.mubr.msk.f32.mxu1 %vm1992_vm2, %v1990_v20 }
 0x6a6   :  { %1894 = vmatprep.subr.mxu1 %v1990_v20 }
 0x6a8   :  { %1887 = vmatmul.mubr.msk.f32.vlgmr.msra.gmra.mrb[14].mxu1 %vm223_vm3, %v1343_v54 }
 0x6a9   :  { %1896 = vmatprep.mubr.msk.f32.mxu1 %vm1992_vm2, %v1990_v20 }
 0x6c1   :  { %v1511_v55 = vpop.xlane.xlu1 %1510 }
 0x6c2   :  { %1988 = vrcp.f32 %v1511_v55 }
 0x6c5   :  { %v1518_v56 = vpop.permute.xlu1 %1517 }
 0x6c6   :  { %1895 = vmatpush3.msra.mxu1 %v1518_v56 }
 0x6cc   :  { %v1989_v57 = vpop.eup %1988 }
 0x6cd   :  { %v1513_v58 = vmul.f32 %v1989_v57, %v1511_v55 }
 0x6cf   :  { %v1514_v59 = vsub.f32 2.0, %v1513_v58 }
 0x6d1   :  { %v1515_v60 = vmul.f32 %v1989_v57, %v1514_v59 }
 0x6d3   :  { %v1516_v61 = vmul.f32 %v2221_v8, %v1515_v60 }
 0x6d5   :  { %1897 = vmatmul.mubr.msk.f32.vlgmr.msra.gmra.mrb[16].mxu1 %vm223_vm3, %v1516_v61 }
 0x736   :  { %v553_v62 = vpop.f32.mrb[4].mxu1 }
 0x737   :  { %558 = vrot.lane.b32.xlu0 %v553_v62, %s2003_s21  ;;  %v1838_v63 = vpop.f32.mrb[5].mxu1 }
 0x73a   :  { %v727_v0 = vpop.f32.mrb[6].mxu1 }
 0x73b   :  { %732 = vrot.lane.b32.xlu1 %v727_v0, %s2004_s22  ;;  %v1848_v20 = vpop.f32.mrb[7].mxu1 }
 0x76f   :  { %v901_v1 = vpop.f32.mrb[8].mxu1 }
 0x770   :  { %906 = vrot.lane.b32.xlu1 %v901_v1, %s2005_s23  ;;  %v1858_v2 = vpop.f32.mrb[9].mxu1 }
 0x773   :  { %v1074_v3 = vpop.f32.mrb[10].mxu1 }
 0x774   :  { %1078 = vst.msk [vmem:[#allocation2 + $0x8] sm:$0xff] %vm223_vm3, %v1074_v3  ;;  %v1868_v4 = vpop.f32.mrb[11].mxu1 }
 0x777   :  { %v1243_v5 = vpop.f32.mrb[12].mxu1 }
 0x778   :  { %1248 = vrot.lane.b32.xlu0 %v1243_v5, %s2003_s21  ;;  %v1878_v6 = vpop.f32.mrb[13].mxu1 }
 0x77b   :  { %v1416_v7 = vpop.f32.mrb[14].mxu1 }
 0x77c   :  { %1421 = vrot.lane.b32.xlu0 %v1416_v7, %s2004_s22  ;;  %v1888_v8 = vpop.f32.mrb[15].mxu1 }
 0x7a8   :  { %v1589_v15 = vpop.f32.mrb[16].mxu1 }
 0x7a9   :  { %v559_v16 = vpop.permute.xlu0 %558  ;;  %1594 = vrot.lane.b32.xlu1 %v1589_v15, %s2005_s23  ;;  %v1898_v17 = vpop.f32.mrb[17].mxu1 }
 0x7aa   :  { %562 = vst.msk [vmem:[#allocation2] sm:$0xff] %vm561_vm4, %v559_v16 }
 0x7ad   :  { %v733_v18 = vpop.permute.xlu1 %732 }
 0x7ae   :  { %736 = vst.msk [vmem:[#allocation2] sm:$0xff] %vm735_vm5, %v733_v18 }
 0x7e2   :  { %v907_v19 = vpop.permute.xlu1 %906 }
 0x7e3   :  { %910 = vst.msk [vmem:[#allocation2] sm:$0xff] %vm909_vm6, %v907_v19 }
 0x7ea   :  { %v1249_v21 = vpop.permute.xlu0 %1248  ;;  %v1598_v22 = vld [vmem:[#allocation2] sm:$0xff] }
 0x7eb   :  { %1251 = vst.msk [vmem:[#allocation2 + $0x8] sm:$0xff] %vm561_vm4, %v1249_v21  ;;  %1907 = vmatprep.mubr.msk.f32.mxu0 %vm36_vm0, %v1598_v22 }
 0x7ee   :  { %v1422_v23 = vpop.permute.xlu0 %1421 }
 0x7ef   :  { %1424 = vst.msk [vmem:[#allocation2 + $0x8] sm:$0xff] %vm735_vm5, %v1422_v23 }
 0x81b   :  { %v1595_v26 = vpop.permute.xlu1 %1594 }
 0x81c   :  { %1597 = vst.msk [vmem:[#allocation2 + $0x8] sm:$0xff] %vm909_vm6, %v1595_v26 }
 0x823   :  { %v1599_v27 = vld [vmem:[#allocation2 + $0x8] sm:$0xff] }
 0x824   :  { %1908 = vmatmul.mubr.msk.f32.vlgmr.msra.gmra.mrb[18].mxu0 %vm36_vm0, %v1599_v27 }
 0x8f7   :  { %v1909_v29 = vpop.f32.mrb[18].mxu0 }
 0x8f8   :  { %v1689_v30 = vadd.f32 %v1909_v29, %v1732_v28  ;;  %v1683_v31 = vpop.f32.mrb[19].mxu0 }
 0x8f9   :  { %v1684_v32 = vadd.f32 %v1732_v28, %v1683_v31 }
 0x8fa   :  { %v1693_v33 = vsel %vm36_vm0, %v1689_v30, %v2092_v25 }
 0x8fb   :  { %v1696_v34 = vsel %vm1694_vm7, %v1693_v33, 0.0  ;;  %v1692_v35 = vsel %vm36_vm0, %v1684_v32, %v2090_v24 }
 0x8fc   :  { %1698 = vst [vmem:[%s2293_s6 + $0x8] sm:$0xff] %v1696_v34  ;;  %v1695_v36 = vsel %vm1694_vm7, %v1692_v35, 0.0 }
 0x8fd   :  { %1697 = vst [vmem:[%s2293_s6] sm:$0xff] %v1695_v36 }

</bundles_post_ra>
